<compile_context>
chip_gen: v7x
topology: tpu7x:2x2x1
jax: 0.10.0
libtpu: 0.0.40
codegen_flags: <defaults>
</compile_context>

<pallas_src>
import jax
import jax.numpy as jnp
from jax.experimental import pallas as pl
from jax.experimental.pallas import tpu as pltpu

NUM_CLASSES = 10
HIDDEN1 = 128
HIDDEN2 = 64
IN_FEATURES = 784
LANE = 128          # padded width for hidden2 / output
TB_MAX = 256        # batch tile; 2x double-buffered bf16 x tiles ~0.8 MiB


def _round_up(n, m):
    return ((n + m - 1) // m) * m


def mlp_kernel(x_ref, w1_ref, b1_ref, w2_ref, b2_ref, w3_ref, b3_ref, o_ref):
    # x_ref: (TB, 784) bf16; weights bf16; biases f32; o_ref: (TB, 128) f32.
    x = x_ref[...]

    # fc1 + ReLU  (bf16 MXU operands, f32 accumulation & elementwise)
    h1 = jnp.dot(x, w1_ref[...], preferred_element_type=jnp.float32) + b1_ref[...]
    h1 = jnp.maximum(h1, 0.0)

    # fc2 + ReLU  (hidden2 zero-padded 64 -> 128; padded lanes stay exactly 0)
    h2 = jnp.dot(h1.astype(jnp.bfloat16), w2_ref[...],
                 preferred_element_type=jnp.float32) + b2_ref[...]
    h2 = jnp.maximum(h2, 0.0)

    # fc3  (output zero-padded 10 -> 128 lanes)
    logits = jnp.dot(h2.astype(jnp.bfloat16), w3_ref[...],
                     preferred_element_type=jnp.float32) + b3_ref[...]

    # log_softmax over the 10 real classes only: mask padded lanes out of
    # the max / sum, numerically stable form.
    col = jax.lax.broadcasted_iota(jnp.int32, logits.shape, dimension=1)
    valid = col < NUM_CLASSES
    masked = jnp.where(valid, logits, jnp.float32(-1e30))
    m = jnp.max(masked, axis=-1, keepdims=True)
    shifted = masked - m
    expv = jnp.where(valid, jnp.exp(shifted), 0.0)
    lse = jnp.log(jnp.sum(expv, axis=-1, keepdims=True))
    o_ref[...] = shifted - lse


def network_forward(x, params):
    """x: (B, 1, 28, 28) or any (B, ...) that flattens to 784 features."""
    w1, b1, w2, b2, w3, b3 = params
    B = x.shape[0]
    x2d = x.reshape(B, -1).astype(jnp.float32)  # x.view(x.shape[0], -1)
    assert x2d.shape[1] == IN_FEATURES

    # --- pack / pad parameters for the kernel ---------------------------
    # w: (in, out) bf16; biases f32. hidden2 and output padded to 128 lanes.
    w1p = w1.astype(jnp.bfloat16)                                   # (784, 128)
    b1p = b1.reshape(1, HIDDEN1).astype(jnp.float32)                # (1, 128)

    w2p = jnp.zeros((HIDDEN1, LANE), jnp.float32).at[:, :HIDDEN2].set(w2)
    w2p = w2p.astype(jnp.bfloat16)                                  # (128, 128)
    b2p = jnp.zeros((1, LANE), jnp.float32).at[:, :HIDDEN2].set(
        b2.reshape(1, HIDDEN2))                                     # (1, 128)

    w3p = jnp.zeros((LANE, LANE), jnp.float32).at[:HIDDEN2, :NUM_CLASSES].set(w3)
    w3p = w3p.astype(jnp.bfloat16)                                  # (128, 128)
    b3p = jnp.zeros((1, LANE), jnp.float32).at[:, :NUM_CLASSES].set(
        b3.reshape(1, NUM_CLASSES))                                 # (1, 128)

    # --- batch tiling ----------------------------------------------------
    tb = min(TB_MAX, _round_up(B, 8))
    b_pad = _round_up(B, tb)
    x_pad = jnp.zeros((b_pad, IN_FEATURES), jnp.bfloat16)
    x_pad = x_pad.at[:B, :].set(x2d.astype(jnp.bfloat16))
    grid = (b_pad // tb,)

    out_padded = pl.pallas_call(
        mlp_kernel,
        out_shape=jax.ShapeDtypeStruct((b_pad, LANE), jnp.float32),
        grid=grid,
        in_specs=[
            pl.BlockSpec((tb, IN_FEATURES), lambda i: (i, 0)),   # x tile
            pl.BlockSpec((IN_FEATURES, HIDDEN1), lambda i: (0, 0)),  # w1
            pl.BlockSpec((1, HIDDEN1), lambda i: (0, 0)),            # b1
            pl.BlockSpec((HIDDEN1, LANE), lambda i: (0, 0)),         # w2 (padded)
            pl.BlockSpec((1, LANE), lambda i: (0, 0)),               # b2 (padded)
            pl.BlockSpec((LANE, LANE), lambda i: (0, 0)),            # w3 (padded)
            pl.BlockSpec((1, LANE), lambda i: (0, 0)),               # b3 (padded)
        ],
        out_specs=pl.BlockSpec((tb, LANE), lambda i: (i, 0)),
        compiler_params=pltpu.CompilerParams(
            dimension_semantics=("parallel",)),
    )(x_pad, w1p, b1p, w2p, b2p, w3p, b3p)

    return out_padded[:B, :NUM_CLASSES]


def init_params(key):
    """Deterministic init mirroring nn.Linear shapes (stored transposed, f32)."""
    def linear(k, fan_in, fan_out):
        kw, kb = jax.random.split(k)
        bound = 1.0 / jnp.sqrt(fan_in)
        # PyTorch weight is (out, in); we store (in, out) for x @ W.
        w = jax.random.uniform(kw, (fan_in, fan_out), jnp.float32, -bound, bound)
        b = jax.random.uniform(kb, (1, fan_out), jnp.float32, -bound, bound)
        return w, b

    k1, k2, k3 = jax.random.split(key, 3)
    w1, b1 = linear(k1, IN_FEATURES, HIDDEN1)
    w2, b2 = linear(k2, HIDDEN1, HIDDEN2)
    w3, b3 = linear(k3, HIDDEN2, NUM_CLASSES)
    return (w1, b1, w2, b2, w3, b3)


if __name__ == "__main__":
    key = jax.random.PRNGKey(0)
    kx, kp = jax.random.split(key)

    # Small MNIST-like batch: (B, 1, 28, 28) NCHW -> flattens to 784 features.
    x = jax.random.normal(kx, (8, 1, 28, 28), jnp.float32)
    params = init_params(kp)

    out = network_forward(x, params)
    out = jax.block_until_ready(out)

    # Reference check in plain JAX (f32) — tolerance accounts for the bf16
    # matmul operands in the kernel.
    w1, b1, w2, b2, w3, b3 = params
    xf = x.reshape(x.shape[0], -1)
    h1 = jnp.maximum(xf @ w1 + b1, 0.0)
    h2 = jnp.maximum(h1 @ w2 + b2, 0.0)
    logits = h2 @ w3 + b3
    ref = jax.nn.log_softmax(logits, axis=1)

    assert out.shape == (8, NUM_CLASSES)
    assert jnp.allclose(out, ref, atol=5e-2, rtol=5e-2), (
        float(jnp.max(jnp.abs(out - ref))))
    # Sanity: rows are valid log-probabilities.
    assert jnp.allclose(jnp.sum(jnp.exp(out), axis=1), 1.0, atol=1e-3)

    print("KERNEL_OK")
</pallas_src>

<mosaic_0001>
module attributes {stable_mosaic.version = 11 : i64} {
  func.func @mlp_kernel(%arg0: i32, %arg1: memref<8x784xbf16, #tpu.memory_space<vmem>>, %arg2: memref<784x128xbf16, #tpu.memory_space<vmem>>, %arg3: memref<1x128xf32, #tpu.memory_space<vmem>>, %arg4: memref<128x128xbf16, #tpu.memory_space<vmem>>, %arg5: memref<1x128xf32, #tpu.memory_space<vmem>>, %arg6: memref<128x128xbf16, #tpu.memory_space<vmem>>, %arg7: memref<1x128xf32, #tpu.memory_space<vmem>>, %arg8: memref<8x128xf32, #tpu.memory_space<vmem>>) attributes {dimension_semantics = [#tpu.dimension_semantics<parallel>], iteration_bounds = array<i64: 1>, scalar_prefetch = 0 : i64, scratch_operands = 0 : i64, tpu.core_type = #tpu.core_type<tc>, window_params = [{transform_indices = @transform_0, window_bounds = array<i64: 8, 784>}, {pipeline_mode = #tpu.pipeline_mode<synchronous>, transform_indices = @transform_1, window_bounds = array<i64: 784, 128>}, {pipeline_mode = #tpu.pipeline_mode<synchronous>, transform_indices = @transform_2, window_bounds = array<i64: 1, 128>}, {pipeline_mode = #tpu.pipeline_mode<synchronous>, transform_indices = @transform_3, window_bounds = array<i64: 128, 128>}, {pipeline_mode = #tpu.pipeline_mode<synchronous>, transform_indices = @transform_4, window_bounds = array<i64: 1, 128>}, {pipeline_mode = #tpu.pipeline_mode<synchronous>, transform_indices = @transform_5, window_bounds = array<i64: 128, 128>}, {pipeline_mode = #tpu.pipeline_mode<synchronous>, transform_indices = @transform_6, window_bounds = array<i64: 1, 128>}, {transform_indices = @transform_7, window_bounds = array<i64: 8, 128>}]} {
    %c0 = arith.constant 0 : index
    %c0_0 = arith.constant 0 : index
    %0 = vector.load %arg1[%c0, %c0_0] : memref<8x784xbf16, #tpu.memory_space<vmem>>, vector<8x784xbf16>
    %c0_1 = arith.constant 0 : index
    %c0_2 = arith.constant 0 : index
    %1 = vector.load %arg2[%c0_1, %c0_2] : memref<784x128xbf16, #tpu.memory_space<vmem>>, vector<784x128xbf16>
    %cst = arith.constant dense<0.000000e+00> : vector<8x128xf32>
    %2 = tpu.matmul %0, %1, %cst {dimension_numbers = #tpu.dot_dimension_numbers<[1], [0], [0], [1], [0, 0, 1, 1], [], []>} : vector<8x784xbf16>, vector<784x128xbf16>, vector<8x128xf32> -> vector<8x128xf32>
    %c0_3 = arith.constant 0 : index
    %c0_4 = arith.constant 0 : index
    %3 = vector.load %arg3[%c0_3, %c0_4] : memref<1x128xf32, #tpu.memory_space<vmem>>, vector<1x128xf32>
    %4 = vector.broadcast %3 : vector<1x128xf32> to vector<8x128xf32>
    %5 = arith.addf %2, %4 : vector<8x128xf32>
    %cst_5 = arith.constant 0.000000e+00 : f32
    %6 = vector.broadcast %cst_5 : f32 to vector<8x128xf32>
    %7 = arith.maximumf %5, %6 : vector<8x128xf32>
    %8 = arith.truncf %7 : vector<8x128xf32> to vector<8x128xbf16>
    %c0_6 = arith.constant 0 : index
    %c0_7 = arith.constant 0 : index
    %9 = vector.load %arg4[%c0_6, %c0_7] : memref<128x128xbf16, #tpu.memory_space<vmem>>, vector<128x128xbf16>
    %cst_8 = arith.constant dense<0.000000e+00> : vector<8x128xf32>
    %10 = tpu.matmul %8, %9, %cst_8 {dimension_numbers = #tpu.dot_dimension_numbers<[1], [0], [0], [1], [0, 0, 1, 1], [], []>} : vector<8x128xbf16>, vector<128x128xbf16>, vector<8x128xf32> -> vector<8x128xf32>
    %c0_9 = arith.constant 0 : index
    %c0_10 = arith.constant 0 : index
    %11 = vector.load %arg5[%c0_9, %c0_10] : memref<1x128xf32, #tpu.memory_space<vmem>>, vector<1x128xf32>
    %12 = vector.broadcast %11 : vector<1x128xf32> to vector<8x128xf32>
    %13 = arith.addf %10, %12 : vector<8x128xf32>
    %cst_11 = arith.constant 0.000000e+00 : f32
    %14 = vector.broadcast %cst_11 : f32 to vector<8x128xf32>
    %15 = arith.maximumf %13, %14 : vector<8x128xf32>
    %16 = arith.truncf %15 : vector<8x128xf32> to vector<8x128xbf16>
    %c0_12 = arith.constant 0 : index
    %c0_13 = arith.constant 0 : index
    %17 = vector.load %arg6[%c0_12, %c0_13] : memref<128x128xbf16, #tpu.memory_space<vmem>>, vector<128x128xbf16>
    %cst_14 = arith.constant dense<0.000000e+00> : vector<8x128xf32>
    %18 = tpu.matmul %16, %17, %cst_14 {dimension_numbers = #tpu.dot_dimension_numbers<[1], [0], [0], [1], [0, 0, 1, 1], [], []>} : vector<8x128xbf16>, vector<128x128xbf16>, vector<8x128xf32> -> vector<8x128xf32>
    %c0_15 = arith.constant 0 : index
    %c0_16 = arith.constant 0 : index
    %19 = vector.load %arg7[%c0_15, %c0_16] : memref<1x128xf32, #tpu.memory_space<vmem>>, vector<1x128xf32>
    %20 = vector.broadcast %19 : vector<1x128xf32> to vector<8x128xf32>
    %21 = arith.addf %18, %20 : vector<8x128xf32>
    %22 = tpu.iota {dimensions = array<i32: 1>} : vector<8x128xi32>
    %c10_i32 = arith.constant 10 : i32
    %23 = vector.broadcast %c10_i32 : i32 to vector<8x128xi32>
    %24 = arith.cmpi slt, %22, %23 : vector<8x128xi32>
    %cst_17 = arith.constant -1.000000e+30 : f32
    %25 = vector.broadcast %cst_17 : f32 to vector<8x128xf32>
    %26 = arith.select %24, %21, %25 : vector<8x128xi1>, vector<8x128xf32>
    %cst_18 = arith.constant dense<0xFF800000> : vector<8xf32>
    %27 = vector.multi_reduction <maximumf>, %26, %cst_18 [1] : vector<8x128xf32> to vector<8xf32>
    %28 = vector.shape_cast %27 : vector<8xf32> to vector<8x1xf32>
    %29 = vector.broadcast %28 : vector<8x1xf32> to vector<8x128xf32>
    %30 = arith.subf %26, %29 : vector<8x128xf32>
    %31 = math.exp %30 : vector<8x128xf32>
    %cst_19 = arith.constant 0.000000e+00 : f32
    %32 = vector.broadcast %cst_19 : f32 to vector<8x128xf32>
    %33 = arith.select %24, %31, %32 : vector<8x128xi1>, vector<8x128xf32>
    %cst_20 = arith.constant dense<0.000000e+00> : vector<8xf32>
    %34 = vector.multi_reduction <add>, %33, %cst_20 [1] : vector<8x128xf32> to vector<8xf32>
    %35 = vector.shape_cast %34 : vector<8xf32> to vector<8x1xf32>
    %36 = math.log %35 : vector<8x1xf32>
    %37 = vector.broadcast %36 : vector<8x1xf32> to vector<8x128xf32>
    %38 = arith.subf %30, %37 : vector<8x128xf32>
    %c0_21 = arith.constant 0 : index
    %c0_22 = arith.constant 0 : index
    %39 = vector.load %arg8[%c0_21, %c0_22] : memref<8x128xf32, #tpu.memory_space<vmem>>, vector<8x128xf32>
    tpu.vector_store %arg8[%c0_21, %c0_22], %38 {strides = array<i32>} : memref<8x128xf32, #tpu.memory_space<vmem>>, vector<8x128xf32>,
    return
  }
  func.func @transform_0(%arg0: i32) -> (i32, i32) {
    %c0_i32 = arith.constant 0 : i32
    %c0_i32_0 = arith.constant 0 : i32
    return %arg0, %c0_i32 : i32, i32
  }
  func.func @transform_1(%arg0: i32) -> (i32, i32) {
    %c0_i32 = arith.constant 0 : i32
    %c0_i32_0 = arith.constant 0 : i32
    %c0_i32_1 = arith.constant 0 : i32
    return %c0_i32, %c0_i32_0 : i32, i32
  }
  func.func @transform_2(%arg0: i32) -> (i32, i32) {
    %c0_i32 = arith.constant 0 : i32
    %c0_i32_0 = arith.constant 0 : i32
    %c0_i32_1 = arith.constant 0 : i32
    return %c0_i32, %c0_i32_0 : i32, i32
  }
  func.func @transform_3(%arg0: i32) -> (i32, i32) {
    %c0_i32 = arith.constant 0 : i32
    %c0_i32_0 = arith.constant 0 : i32
    %c0_i32_1 = arith.constant 0 : i32
    return %c0_i32, %c0_i32_0 : i32, i32
  }
  func.func @transform_4(%arg0: i32) -> (i32, i32) {
    %c0_i32 = arith.constant 0 : i32
    %c0_i32_0 = arith.constant 0 : i32
    %c0_i32_1 = arith.constant 0 : i32
    return %c0_i32, %c0_i32_0 : i32, i32
  }
  func.func @transform_5(%arg0: i32) -> (i32, i32) {
    %c0_i32 = arith.constant 0 : i32
    %c0_i32_0 = arith.constant 0 : i32
    %c0_i32_1 = arith.constant 0 : i32
    return %c0_i32, %c0_i32_0 : i32, i32
  }
  func.func @transform_6(%arg0: i32) -> (i32, i32) {
    %c0_i32 = arith.constant 0 : i32
    %c0_i32_0 = arith.constant 0 : i32
    %c0_i32_1 = arith.constant 0 : i32
    return %c0_i32, %c0_i32_0 : i32, i32
  }
  func.func @transform_7(%arg0: i32) -> (i32, i32) {
    %c0_i32 = arith.constant 0 : i32
    %c0_i32_0 = arith.constant 0 : i32
    return %arg0, %c0_i32 : i32, i32
  }
}

</mosaic_0001>

<bundles_post_ra>
// kernel: tpu_custom_call.1
= control target key start
LH: loop header
LB: loop body
LE: loop exit
PB: predicated region body
PF: predicated region fallthrough
CT: control target
= control target key end

     0   :  { %12 = vsyncpa [#allocation3], 0  ;;  %s1492_s0 = inlined_call_operand.hbm [shape: bf16[8,784], index: 0, kind: input, shape index: {}]   ;;  %s1493_s1 = inlined_call_operand.hbm [shape: bf16[784,128], index: 1, kind: input, shape index: {}]   ;;  %s1494_s2 = inlined_call_operand.vmem [shape: f32[1,128], index: 2, kind: input, shape index: {}]   ;;  %s1495_s3 = inlined_call_operand.hbm [shape: bf16[128,128], index: 3, kind: input, shape index: {}]   ;;  %s1496_s4 = inlined_call_operand.vmem [shape: f32[1,128], index: 4, kind: input, shape index: {}]   ;;  %s1497_s5 = inlined_call_operand.hbm [shape: bf16[128,128], index: 5, kind: input, shape index: {}]   ;;  %s1498_s6 = inlined_call_operand.vmem [shape: f32[1,128], index: 6, kind: input, shape index: {}]   ;;  %s1499_s7 = inlined_call_operand.hbm [shape: f32[8,128], index: 7, kind: output, shape index: {}]  }
   0x1   :  { %13 = vsyncpa [#allocation6], 0 }
   0x2   :  { %14 = vsyncpa [#allocation9], 0 }
   0x3   :  { %15 = vsyncpa [#allocation4], 0  ;;  %s1342_s24 = smov [#allocation5]   ;;  %s1224_s28 = scalar_lea.hbm %s1493_s1, 6272 }
   0x4   :  { %s31_s25 = sshll.u32 %s1342_s24, 4  ;;  %p1225_p0 = scmp.ne.s32.totalorder %s1493_s1, %s1224_s28  ;;  %s32_s25 = int_to_ptr.vmem [resolvable:$true] %s31_s25 }
   0x5   :  { %p1228_p1 = scmp.lt.u32.totalorder %s1224_s28, %s1493_s1 }
   0x7   :  { %p1230_p2 = pnand %p1228_p1, %p1225_p0 }
   0x9   :  { %1233 = shalt.err (!%p1230_p2)
}
   0xa   :  { %s1234_s10 = scalar_lea.vmem %s32_s25, 6272  ;;  %p1239_p4 = scmp.lt.s32.totalorder %s32_s25, %s32_s25 }
   0xb   :  { %p1235_p3 = scmp.ne.s32.totalorder %s32_s25, %s1234_s10  ;;  %p1240_p5 = scmp.lt.s32.totalorder %s1234_s10, %s1234_s10 }
   0xd   :  { %p1241_p6 = por %p1240_p5, %p1239_p4 }
   0xf   :  { %p1242_p7 = pnand %p1241_p6, %p1235_p3 }
  0x11   :  { %1245 = shalt.err (!%p1242_p7)
}
  0x12   :  { %s1343_s11 = smov 64   ;;  %s1344_s12 = smov 4  }
  0x13   :  { %37 = dma.hbm_to_vmem [thread:$0]  %s1493_s1, 6272, %s32_s25, [#allocation6], %s1343_s11, %s1343_s11, %s1344_s12  }
  0x14   :  { %s1345_s15 = smov [#allocation2]   ;;  %s1346_s17 = smov [#allocation7]  }
  0x15   :  { %s22_s16 = sshll.u32 %s1345_s15, 4  ;;  %s45_s18 = sshll.u32 %s1346_s17, 4  ;;  %s23_s16 = int_to_ptr.vmem [resolvable:$true] %s22_s16  ;;  %s46_s18 = int_to_ptr.vmem [resolvable:$true] %s45_s18 }
  0x16   :  { %s1246_s21 = scalar_lea.hbm %s1492_s0, 448 }
  0x17   :  { %p1247_p8 = scmp.ne.s32.totalorder %s1492_s0, %s1246_s21  ;;  %p1250_p9 = scmp.lt.u32.totalorder %s1246_s21, %s1492_s0 }
  0x19   :  { %p1252_p10 = pnand %p1250_p9, %p1247_p8 }
  0x1b   :  { %1255 = shalt.err (!%p1252_p10)
}
  0x1c   :  { %s1256_s1 = scalar_lea.vmem %s23_s16, 448  ;;  %p1261_p12 = scmp.lt.s32.totalorder %s23_s16, %s23_s16 }
  0x1d   :  { %p1257_p11 = scmp.ne.s32.totalorder %s23_s16, %s1256_s1  ;;  %p1262_p13 = scmp.lt.s32.totalorder %s1256_s1, %s1256_s1 }
  0x1f   :  { %p1263_p0 = por %p1262_p13, %p1261_p12 }
  0x21   :  { %p1264_p1 = pnand %p1263_p0, %p1257_p11 }
  0x23   :  { %1267 = shalt.err (!%p1264_p1)
}
  0x24   :  { %25 = dma.hbm_to_vmem [thread:$0]  %s1492_s0, 448, %s23_s16, [#allocation3]  }
  0x25   :  { %s1268_s30 = scalar_lea.hbm %s1495_s3, 1024 }
  0x26   :  { %p1269_p2 = scmp.ne.s32.totalorder %s1495_s3, %s1268_s30  ;;  %p1272_p3 = scmp.lt.u32.totalorder %s1268_s30, %s1495_s3 }
  0x28   :  { %p1274_p4 = pnand %p1272_p3, %p1269_p2 }
  0x2a   :  { %1277 = shalt.err (!%p1274_p4)
}
  0x2b   :  { %s1278_s14 = scalar_lea.vmem %s46_s18, 1024  ;;  %p1283_p6 = scmp.lt.s32.totalorder %s46_s18, %s46_s18 }
  0x2c   :  { %p1279_p5 = scmp.ne.s32.totalorder %s46_s18, %s1278_s14  ;;  %p1284_p7 = scmp.lt.s32.totalorder %s1278_s14, %s1278_s14 }
  0x2e   :  { %p1285_p8 = por %p1284_p7, %p1283_p6 }
  0x30   :  { %p1286_p9 = pnand %p1285_p8, %p1279_p5 }
  0x32   :  { %1289 = shalt.err (!%p1286_p9)
}
  0x33   :  { %51 = dma.hbm_to_vmem [thread:$0]  %s1495_s3, 1024, %s46_s18, [#allocation6], %s1343_s11, %s1343_s11, %s1344_s12  }
  0x34   :  { %s1347_s16 = smov [#allocation8]   ;;  %s1290_s21 = scalar_lea.hbm %s1497_s5, 1024 }
  0x35   :  { %s59_s17 = sshll.u32 %s1347_s16, 4  ;;  %p1291_p10 = scmp.ne.s32.totalorder %s1497_s5, %s1290_s21  ;;  %s60_s17 = int_to_ptr.vmem [resolvable:$true] %s59_s17 }
  0x36   :  { %p1294_p11 = scmp.lt.u32.totalorder %s1290_s21, %s1497_s5 }
  0x38   :  { %p1296_p12 = pnand %p1294_p11, %p1291_p10 }
  0x3a   :  { %1299 = shalt.err (!%p1296_p12)
}
  0x3b   :  { %s1300_s1 = scalar_lea.vmem %s60_s17, 1024  ;;  %p1305_p0 = scmp.lt.s32.totalorder %s60_s17, %s60_s17 }
  0x3c   :  { %p1301_p13 = scmp.ne.s32.totalorder %s60_s17, %s1300_s1  ;;  %p1306_p1 = scmp.lt.s32.totalorder %s1300_s1, %s1300_s1 }
  0x3e   :  { %p1307_p2 = por %p1306_p1, %p1305_p0 }
  0x40   :  { %p1308_p3 = pnand %p1307_p2, %p1301_p13 }
  0x42   :  { %1311 = shalt.err (!%p1308_p3)
}
  0x43   :  { %65 = dma.hbm_to_vmem [thread:$0]  %s1497_s5, 1024, %s60_s17, [#allocation9], %s1343_s11, %s1343_s11, %s1344_s12  }
  0x44   :  { %1334 = dma.done.wait [#allocation3], 448  }
  0x45   :  { %1335 = vsyncadd [#allocation3], 4294966848 }
  0x46   :  { %1336 = dma.done.wait [#allocation6], 7296  }
  0x47   :  { %1337 = vsyncadd [#allocation6], 4294960000 }
  0x48   :  { %1338 = dma.done.wait [#allocation9], 1024  }
  0x49   :  { %1339 = vsyncadd [#allocation9], 4294966272  ;;  %v1148_v0 = vld [vmem:[#allocation5 + $0x40] sm:$0xff]   ;;  %v1152_v4 = vld [vmem:[#allocation5 + $0x48] sm:$0xff]   ;;  %v1348_v43 = vmov 0.0   ;;  %vm1349_vm0 = vmmov 0  }
  0x4a   :  { %v1149_v1 = vld [vmem:[#allocation5] sm:$0xff]   ;;  %1007 = vmatprep.subr.bf16.mxu0 %v1148_v0  ;;  %v1153_v5 = vld [vmem:[#allocation5 + $0x8] sm:$0xff]   ;;  %v1156_v8 = vld [vmem:[#allocation5 + $0x50] sm:$0xff]   ;;  %vm508_vm1 = vcmask 130048  }
  0x4b   :  { %v1150_v2 = vld [vmem:[#allocation5 + $0xc0] sm:$0xff]   ;;  %1008 = vmatpush3.bf16.msra.mxu0 %v1149_v1  ;;  %v1154_v6 = vld [vmem:[#allocation5 + $0xc8] sm:$0xff]   ;;  %v1157_v9 = vld [vmem:[#allocation5 + $0x10] sm:$0xff]  }
  0x4c   :  { %v1151_v3 = vld [vmem:[#allocation5 + $0x80] sm:$0xff]   ;;  %1029 = vmatprep.subr.bf16.mxu1 %v1150_v2  ;;  %1009 = vmatprep.subr.bf16.mxu0 %v1152_v4  ;;  %v1155_v7 = vld [vmem:[#allocation5 + $0x88] sm:$0xff]   ;;  %v1158_v10 = vld [vmem:[#allocation5 + $0xd0] sm:$0xff]  }
  0x4d   :  { %1030 = vmatpush3.bf16.msra.mxu1 %v1151_v3  ;;  %v1159_v11 = vld [vmem:[#allocation5 + $0x90] sm:$0xff]   ;;  %v1160_v12 = vld [vmem:[#allocation5 + $0x58] sm:$0xff]   ;;  %v1164_v16 = vld [vmem:[#allocation5 + $0x60] sm:$0xff]  }
  0x4e   :  { %1031 = vmatprep.subr.bf16.mxu1 %v1154_v6  ;;  %v1161_v13 = vld [vmem:[#allocation5 + $0x18] sm:$0xff]   ;;  %v1165_v17 = vld [vmem:[#allocation5 + $0x20] sm:$0xff]   ;;  %v1168_v20 = vld [vmem:[#allocation5 + $0x68] sm:$0xff]  }
  0x4f   :  { %1010 = vmatpush3.bf16.msra.mxu0 %v1153_v5  ;;  %v1162_v14 = vld [vmem:[#allocation5 + $0xd8] sm:$0xff]   ;;  %v1166_v18 = vld [vmem:[#allocation5 + $0xe0] sm:$0xff]   ;;  %v1169_v21 = vld [vmem:[#allocation5 + $0x28] sm:$0xff]  }
  0x50   :  { %1011 = vmatprep.subr.bf16.mxu0 %v1156_v8  ;;  %v1163_v15 = vld [vmem:[#allocation5 + $0x98] sm:$0xff]   ;;  %v1167_v19 = vld [vmem:[#allocation5 + $0xa0] sm:$0xff]   ;;  %v1170_v22 = vld [vmem:[#allocation5 + $0xe8] sm:$0xff]  }
  0x51   :  { %1032 = vmatpush3.bf16.msra.mxu1 %v1155_v7  ;;  %v1171_v23 = vld [vmem:[#allocation5 + $0xa8] sm:$0xff]   ;;  %v1172_v24 = vld [vmem:[#allocation5 + $0x70] sm:$0xff]   ;;  %v1176_v28 = vld [vmem:[#allocation5 + $0x78] sm:$0xff]  }
  0x52   :  { %1033 = vmatprep.subr.bf16.mxu1 %v1158_v10  ;;  %v1173_v25 = vld [vmem:[#allocation5 + $0x30] sm:$0xff]   ;;  %v1177_v29 = vld [vmem:[#allocation5 + $0x38] sm:$0xff]   ;;  %v81_v31 = vld [vmem:[#allocation2] sm:$0xff] }
  0x53   :  { %1012 = vmatpush3.bf16.msra.mxu0 %v1157_v9  ;;  %v1174_v26 = vld [vmem:[#allocation5 + $0xf0] sm:$0xff]   ;;  %v1178_v30 = vld [vmem:[#allocation5 + $0xf8] sm:$0xff]   ;;  %v932_v32 = vcombine.low %v81_v31, %v81_v31  ;;  %v933_v33 = vcombine.high %v81_v31, %v81_v31  ;;  %v1182_v35 = vld [vmem:[#allocation5 + $0x140] sm:$0xff]  }
  0x54   :  { %1013 = vmatprep.subr.bf16.mxu0 %v1160_v12  ;;  %v1175_v27 = vld [vmem:[#allocation5 + $0xb0] sm:$0xff]   ;;  %v1181_v34 = vld [vmem:[#allocation5 + $0xb8] sm:$0xff]   ;;  %v1185_v39 = vld [vmem:[#allocation5 + $0x100] sm:$0xff]  }
  0x55   :  { %1034 = vmatpush3.bf16.msra.mxu1 %v1159_v11  ;;  %v82_v36 = vld [vmem:[#allocation2 + $0x8] sm:$0xff]  ;;  %544 = vmatprep.mubr.bf16.mxu0 %v933_v33  ;;  %v1190_v45 = vld [vmem:[#allocation5 + $0x158] sm:$0xff]   ;;  %v1192_v47 = vld [vmem:[#allocation5 + $0x160] sm:$0xff]  }
  0x56   :  { %1035 = vmatprep.subr.bf16.mxu1 %v1162_v14  ;;  %v934_v37 = vcombine.low %v82_v36, %v82_v36  ;;  %v935_v38 = vcombine.high %v82_v36, %v82_v36  ;;  %v1186_v40 = vld [vmem:[#allocation5 + $0x148] sm:$0xff]   ;;  %v1188_v42 = vld [vmem:[#allocation5 + $0x150] sm:$0xff]   ;;  %v1191_v46 = vld [vmem:[#allocation5 + $0x118] sm:$0xff]  }
  0x57   :  { %1014 = vmatpush3.bf16.msra.mxu0 %v1161_v13  ;;  %v1187_v41 = vld [vmem:[#allocation5 + $0x108] sm:$0xff]   ;;  %v1189_v44 = vld [vmem:[#allocation5 + $0x110] sm:$0xff]   ;;  %v1193_v48 = vld [vmem:[#allocation5 + $0x120] sm:$0xff]  }
  0x58   :  { %1015 = vmatprep.subr.bf16.mxu0 %v1164_v16  ;;  %584 = vmatprep.mubr.bf16.mxu1 %v935_v38  ;;  %v1194_v49 = vld [vmem:[#allocation5 + $0x168] sm:$0xff]   ;;  %v1200_v50 = vld [vmem:[#allocation5 + $0x180] sm:$0xff]   ;;  %v83_v51 = vld [vmem:[#allocation2 + $0x10] sm:$0xff] }
  0x59   :  { %1036 = vmatpush3.bf16.msra.mxu1 %v1163_v15  ;;  %v1195_v52 = vld [vmem:[#allocation5 + $0x128] sm:$0xff]   ;;  %v937_v53 = vcombine.high %v83_v51, %v83_v51  ;;  %v1203_v54 = vld [vmem:[#allocation2 + $0x18] ss:$0 sps:$4 sm:$0xff]   ;;  %v1196_v55 = vld [vmem:[#allocation5 + $0x170] sm:$0xff]   ;;  %v936_v59 = vcombine.low %v83_v51, %v83_v51 }
  0x5a   :  { %1037 = vmatprep.subr.bf16.mxu1 %v1166_v18  ;;  %v1197_v56 = vld [vmem:[#allocation5 + $0x130] sm:$0xff]   ;;  %v1198_v57 = vld [vmem:[#allocation5 + $0x178] sm:$0xff]   ;;  %v1204_v60 = vld [vmem:[#allocation7] sm:$0xff]  }
  0x5b   :  { %1016 = vmatpush3.bf16.msra.mxu0 %v1165_v17  ;;  %v1199_v58 = vld [vmem:[#allocation5 + $0x138] sm:$0xff]   ;;  %v1205_v61 = vld [vmem:[#allocation7 + $0x8] sm:$0xff]   ;;  %v1207_v63 = vld [vmem:[#allocation7 + $0x18] sm:$0xff]  }
  0x5c   :  { %1017 = vmatprep.subr.bf16.mxu0 %v1168_v20  ;;  %v1206_v62 = vld [vmem:[#allocation7 + $0x10] sm:$0xff]   ;;  %v1208_v0 = vld [vmem:[#allocation7 + $0x20] sm:$0xff]   ;;  %v1209_v1 = vld [vmem:[#allocation7 + $0x28] sm:$0xff]  }
  0x5d   :  { %1038 = vmatpush3.bf16.msra.mxu1 %v1167_v19  ;;  %v1210_v2 = vld [vmem:[#allocation7 + $0x30] sm:$0xff]   ;;  %v1211_v3 = vld [vmem:[#allocation7 + $0x38] sm:$0xff]   ;;  %v1212_v4 = vld [vmem:[#allocation8] sm:$0xff]  }
  0x5e   :  { %1039 = vmatprep.subr.bf16.mxu1 %v1170_v22  ;;  %v1213_v5 = vld [vmem:[#allocation8 + $0x8] sm:$0xff]   ;;  %v1214_v6 = vld [vmem:[#allocation8 + $0x10] sm:$0xff]   ;;  %v1215_v7 = vld [vmem:[#allocation8 + $0x18] sm:$0xff]  }
  0x5f   :  { %1018 = vmatpush3.bf16.msra.mxu0 %v1169_v21  ;;  %v1216_v8 = vld [vmem:[#allocation8 + $0x20] sm:$0xff]   ;;  %v1217_v9 = vld [vmem:[#allocation8 + $0x28] sm:$0xff]   ;;  %v931_v11 = vld [vmem:[%s1494_s2] ss:$0 sm:$0xff] }
  0x60   :  { %1019 = vmatprep.subr.bf16.mxu0 %v1172_v24  ;;  %v1218_v36 = vld [vmem:[#allocation8 + $0x30] sm:$0xff]   ;;  %v989_v38 = vld [vmem:[%s1496_s4] ss:$0 sm:$0xff]  ;;  %s1350_s4 = smov [#allocation10]  }
  0x61   :  { %1040 = vmatpush3.bf16.msra.mxu1 %v1171_v23 }
  0x62   :  { %1041 = vmatprep.subr.bf16.mxu1 %v1174_v26 }
  0x63   :  { %1020 = vmatpush3.bf16.msra.mxu0 %v1173_v25 }
  0x64   :  { %1021 = vmatprep.subr.bf16.mxu0 %v1176_v28 }
  0x65   :  { %1042 = vmatpush3.bf16.msra.mxu1 %v1175_v27 }
  0x66   :  { %1043 = vmatprep.subr.bf16.mxu1 %v1178_v30 }
  0x67   :  { %1022 = vmatpush3.bf16.msra.mxu0 %v1177_v29 }
  0x68   :  { %1051 = vmatprep.subr.bf16.mxu0 %v1182_v35 }
  0x69   :  { %1044 = vmatpush3.bf16.msra.mxu1 %v1181_v34 }
  0x6a   :  { %545 = vmatmul.mubr.bf16.vlgmr.msra.gmra.mrb[0].mxu0 %v932_v32  ;;  %1093 = vmatprep.subr.bf16.mxu1 %v1348_v43 }
  0x6b   :  { %1052 = vmatpush3.bf16.msra.mxu0 %v1185_v39  ;;  %624 = vmatprep.mubr.bf16.mxu0 %v937_v53 }
  0x6c   :  { %585 = vmatmul.mubr.bf16.vlgmr.msra.gmra.mrb[0].mxu1 %v934_v37  ;;  %1053 = vmatprep.subr.bf16.mxu0 %v1186_v40  ;;  %v1219_v37 = vld [vmem:[#allocation8 + $0x38] sm:$0xff]  }
  0x6d   :  { %1095 = vmatprep.mubr.msk.bf16.mxu1 %vm1349_vm0, %v1348_v43  ;;  %1094 = vmatpush3.bf16.msra.mxu1 %v1200_v50 }
  0x6e   :  { %1099 = vmatprep.subr.bf16.mxu1 %v1348_v43 }
  0x6f   :  { %1054 = vmatpush3.bf16.msra.mxu0 %v1187_v41 }
  0x70   :  { %1055 = vmatprep.subr.bf16.mxu0 %v1188_v42 }
  0x73   :  { %1056 = vmatpush3.bf16.msra.mxu0 %v1189_v44 }
  0x74   :  { %1057 = vmatprep.subr.bf16.mxu0 %v1190_v45  ;;  %1096 = vmatmul.mubr.msk.bf16.vlgmr.msra.gmra.mrb[4].mxu1 %vm508_vm1, %v1203_v54 }
  0x75   :  { %1115 = vmatprep.mubr.msk.bf16.mxu1 %vm1349_vm0, %v1348_v43  ;;  %1100 = vmatpush3.bf16.msra.mxu1 %v1204_v60 }
  0x76   :  { %1101 = vmatprep.subr.bf16.mxu1 %v1348_v43 }
  0x77   :  { %1058 = vmatpush3.bf16.msra.mxu0 %v1191_v46 }
  0x78   :  { %1059 = vmatprep.subr.bf16.mxu0 %v1192_v47  ;;  %v898_v47 = vlaneseq }
  0x79   :  { %1102 = vmatpush3.bf16.msra.mxu1 %v1205_v61 }
  0x7a   :  { %1103 = vmatprep.subr.bf16.mxu1 %v1348_v43 }
  0x7b   :  { %1060 = vmatpush3.bf16.msra.mxu0 %v1193_v48  ;;  %v899_v48 = vand.u32 127, %v898_v47 }
  0x7c   :  { %1061 = vmatprep.subr.bf16.mxu0 %v1194_v49 }
  0x7d   :  { %1104 = vmatpush3.bf16.msra.mxu1 %v1206_v62  ;;  %vm900_vm2 = vcmp.lt.s32.totalorder %v899_v48, 10 }
  0x7e   :  { %1105 = vmatprep.subr.bf16.mxu1 %v1348_v43 }
  0x7f   :  { %1062 = vmatpush3.bf16.msra.mxu0 %v1195_v52 }
  0x80   :  { %1063 = vmatprep.subr.bf16.mxu0 %v1196_v55 }
  0x81   :  { %1106 = vmatpush3.bf16.msra.mxu1 %v1207_v63 }
  0x82   :  { %1107 = vmatprep.subr.bf16.mxu1 %v1348_v43 }
  0x83   :  { %1064 = vmatpush3.bf16.msra.mxu0 %v1197_v56 }
  0x84   :  { %1065 = vmatprep.subr.bf16.mxu0 %v1198_v57 }
  0x85   :  { %1108 = vmatpush3.bf16.msra.mxu1 %v1208_v0 }
  0x86   :  { %1109 = vmatprep.subr.bf16.mxu1 %v1348_v43 }
  0x87   :  { %1066 = vmatpush3.bf16.msra.mxu0 %v1199_v58 }
  0x88   :  { %1119 = vmatprep.subr.bf16.mxu0 %v1348_v43 }
  0x89   :  { %1110 = vmatpush3.bf16.msra.mxu1 %v1209_v1 }
  0x8a   :  { %625 = vmatmul.mubr.bf16.vlgmr.msra.gmra.mrb[4].mxu0 %v936_v59  ;;  %1111 = vmatprep.subr.bf16.mxu1 %v1348_v43 }
  0x8b   :  { %1135 = vmatprep.mubr.msk.bf16.mxu0 %vm1349_vm0, %v1348_v43  ;;  %1120 = vmatpush3.bf16.msra.mxu0 %v1212_v4 }
  0x8c   :  { %1121 = vmatprep.subr.bf16.mxu0 %v1348_v43 }
  0x8d   :  { %1112 = vmatpush3.bf16.msra.mxu1 %v1210_v2 }
  0x8e   :  { %1113 = vmatprep.subr.bf16.mxu1 %v1348_v43 }
  0x8f   :  { %1122 = vmatpush3.bf16.msra.mxu0 %v1213_v5 }
  0x90   :  { %1123 = vmatprep.subr.bf16.mxu0 %v1348_v43 }
  0x91   :  { %1114 = vmatpush3.bf16.msra.mxu1 %v1211_v3 }
  0x93   :  { %1124 = vmatpush3.bf16.msra.mxu0 %v1214_v6 }
  0x94   :  { %1125 = vmatprep.subr.bf16.mxu0 %v1348_v43 }
  0x97   :  { %1126 = vmatpush3.bf16.msra.mxu0 %v1215_v7 }
  0x98   :  { %1127 = vmatprep.subr.bf16.mxu0 %v1348_v43 }
  0x9b   :  { %1128 = vmatpush3.bf16.msra.mxu0 %v1216_v8 }
  0x9c   :  { %1129 = vmatprep.subr.bf16.mxu0 %v1348_v43 }
  0x9f   :  { %1130 = vmatpush3.bf16.msra.mxu0 %v1217_v9 }
  0xa0   :  { %1131 = vmatprep.subr.bf16.mxu0 %v1348_v43 }
  0xa3   :  { %1132 = vmatpush3.bf16.msra.mxu0 %v1218_v36 }
  0xa4   :  { %1133 = vmatprep.subr.bf16.mxu0 %v1348_v43  ;;  %v998_v43 = vld [vmem:[%s1498_s6] ss:$0 sm:$0xff]  ;;  %s920_s6 = sshll.u32 %s1350_s4, 4  ;;  %s921_s6 = int_to_ptr.vmem [resolvable:$true] %s920_s6 }
  0xa5   :  { %s1312_s28 = scalar_lea.vmem %s921_s6, 128  ;;  %p1317_p5 = scmp.lt.s32.totalorder %s921_s6, %s921_s6 }
  0xa6   :  { %p1313_p4 = scmp.ne.s32.totalorder %s921_s6, %s1312_s28  ;;  %p1318_p6 = scmp.lt.s32.totalorder %s1312_s28, %s1312_s28 }
  0xa7   :  { %1134 = vmatpush3.bf16.msra.mxu0 %v1219_v37 }
  0xa8   :  { %p1319_p7 = por %p1318_p6, %p1317_p5 }
  0xaa   :  { %p1320_p8 = pnand %p1319_p7, %p1313_p4 }
 0x13d   :  { %v1023_v10 = vpop.f32.mrb[0].mxu0 }
 0x13e   :  { %v1024_v12 = vpop.f32.mrb[1].mxu0 }
 0x13f   :  { %v1025_v13 = vadd.f32 %v1024_v12, %v1023_v10  ;;  %v1026_v14 = vpop.f32.mrb[2].mxu0  ;;  %v1045_v15 = vpop.f32.mrb[0].mxu1 }
 0x140   :  { %v1027_v16 = vpop.f32.mrb[3].mxu0  ;;  %v1046_v17 = vpop.f32.mrb[1].mxu1 }
 0x141   :  { %v547_v18 = vadd.f32 %v1025_v13, %v931_v11  ;;  %v1047_v19 = vadd.f32 %v1046_v17, %v1045_v15  ;;  %v1048_v20 = vpop.f32.mrb[2].mxu1 }
 0x142   :  { %v1049_v21 = vpop.f32.mrb[3].mxu1 }
 0x143   :  { %v587_v22 = vadd.f32 %v1047_v19, %v547_v18 }
 0x147   :  { %v666_v23 = vpop.f32.mrb[4].mxu1 }
 0x148   :  { %v1097_v24 = vpop.f32.mrb[5].mxu1 }
 0x149   :  { %v669_v25 = vpop.f32.mrb[6].mxu1 }
 0x14a   :  { %v1098_v26 = vpop.f32.mrb[7].mxu1 }
 0x15d   :  { %v1067_v27 = vpop.f32.mrb[4].mxu0 }
 0x15e   :  { %v1068_v28 = vpop.f32.mrb[5].mxu0 }
 0x15f   :  { %v1069_v29 = vadd.f32 %v1068_v28, %v1067_v27  ;;  %v1070_v30 = vpop.f32.mrb[6].mxu0 }
 0x160   :  { %v1071_v31 = vpop.f32.mrb[7].mxu0 }
 0x161   :  { %v627_v32 = vadd.f32 %v1069_v29, %v587_v22 }
 0x163   :  { %v667_v33 = vadd.f32 %v666_v23, %v627_v32 }
 0x165   :  { %v672_v34 = vmax.f32 %v667_v33, 0.0 }
 0x167   :  { %v673_v35 = vpack.c.bf16 %v672_v34, %v672_v34 }
 0x169   :  { %1116 = vmatmul.mubr.bf16.vlgmr.msra.gmra.mrb[8].mxu1 %v673_v35 }
 0x23c   :  { %v779_v39 = vpop.f32.mrb[8].mxu1 }
 0x23d   :  { %v780_v40 = vadd.f32 %v989_v38, %v779_v39  ;;  %v1117_v41 = vpop.f32.mrb[9].mxu1 }
 0x23e   :  { %v782_v42 = vpop.f32.mrb[10].mxu1 }
 0x23f   :  { %v785_v44 = vmax.f32 %v780_v40, 0.0  ;;  %v1118_v45 = vpop.f32.mrb[11].mxu1 }
 0x241   :  { %v786_v46 = vpack.c.bf16 %v785_v44, %v785_v44 }
 0x243   :  { %1136 = vmatmul.mubr.bf16.vlgmr.msra.gmra.mrb[8].mxu0 %v786_v46 }
 0x316   :  { %v892_v49 = vpop.f32.mrb[8].mxu0 }
 0x317   :  { %v893_v50 = vadd.f32 %v998_v43, %v892_v49  ;;  %v1137_v51 = vpop.f32.mrb[9].mxu0 }
 0x318   :  { %v895_v52 = vpop.f32.mrb[10].mxu0 }
 0x319   :  { %v1138_v53 = vpop.f32.mrb[11].mxu0  ;;  %v901_v54 = vsel %vm900_vm2, %v893_v50, -1e+30 }
 0x31a   :  { %902 = vmax.xlane.f32.xlu0 %v901_v54 }
 0x3a7   :  { %v903_v55 = vpop.xlane.xlu0 %902 }
 0x3a8   :  { %v904_v56 = vsub.f32 %v901_v54, %v903_v55 }
 0x3aa   :  { %v905_v57 = vmul.f32 1.442695, %v904_v56 }
 0x3ac   :  { %1220 = vpow2.f32 %v905_v57 }
 0x3b6   :  { %v1221_v58 = vpop.eup %1220 }
 0x3b7   :  { %v907_v59 = vsel %vm900_vm2, %v1221_v58, 0.0 }
 0x3b8   :  { %908 = vadd.xlane.f32.xlu0 %v907_v59 }
 0x445   :  { %v909_v60 = vpop.xlane.xlu0 %908 }
 0x446   :  { %1222 = vlog2.f32 %v909_v60 }
 0x450   :  { %v1223_v61 = vpop.eup %1222 }
 0x451   :  { %v911_v62 = vmul.f32 0.6931472, %v1223_v61 }
 0x453   :  { %v912_v63 = vsub.f32 %v904_v56, %v911_v62 }
 0x455   :  { %913 = vst [vmem:[#allocation10] sm:$0xff] %v912_v63 }
 0x456   :  { %1323 = shalt.err (!%p1320_p8)
}
 0x457   :  { %s1324_s8 = scalar_lea.hbm %s1499_s7, 128 }
 0x458   :  { %p1325_p9 = scmp.ne.s32.totalorder %s1499_s7, %s1324_s8  ;;  %p1328_p10 = scmp.lt.u32.totalorder %s1324_s8, %s1499_s7 }
 0x45a   :  { %p1330_p11 = pnand %p1328_p10, %p1325_p9 }
 0x45c   :  { %1333 = shalt.err (!%p1330_p11)
}
 0x45d   :  { %923 = dma.vmem_to_hbm [thread:$0]  %s921_s6, 128, %s1499_s7, [#allocation4]  }
 0x45e   :  { %1340 = dma.done.wait [#allocation4], 128  }
 0x45f   :  { %1341 = vsyncadd [#allocation4], 4294967168 }
 0x460   :  { %927 = vsyncpa [#allocation3], 1 }
 0x461   :  { %928 = vsyncpa [#allocation6], 1 }
 0x462   :  { %929 = vsyncpa [#allocation9], 1 }
 0x463   :  { %930 = vsyncpa [#allocation4], 1 }

</bundles_post_ra>
